<compile_context>
chip_gen: v7x
topology: tpu7x:2x2x1
jax: 0.10.0
libtpu: 0.0.40
codegen_flags: <defaults>
</compile_context>

<pallas_src>
import functools

import jax
import jax.numpy as jnp
from jax.experimental import pallas as pl
from jax.experimental.pallas import tpu as pltpu


_VMEM_LIMIT = 48 * 1024 * 1024          # safe on v5e/v6e (128 MiB VMEM) and v7x (64 MiB)
_FUSED_SLAB_BYTES = 4 * 1024 * 1024     # single-pass path if one f32 (c, hw) slab <= 4 MiB
_TILE_TARGET_BYTES = 6 * 1024 * 1024    # streaming tile target for the two-pass path


def _choose_block_hw(hw, c, target_bytes=_TILE_TARGET_BYTES):
    """Largest multiple-of-128 lane tile ~ target bytes; full extent if it fits."""
    bhw = max(128, (target_bytes // (4 * c)) // 128 * 128)
    if bhw >= hw:
        return hw          # block == full dim is always a legal block shape
    return bhw


# ---------------------------------------------------------------------------
# Fused single-pass kernel: GAP + fc1/relu/fc2/sigmoid + spatial gate + combine.
# ---------------------------------------------------------------------------
def _make_fused_kernel(inv_hw):
    def kernel(x_ref, w1t_ref, b1_ref, w2_ref, b2_ref, w3_ref, b3_ref, o_ref):
        x = x_ref[0].astype(jnp.float32)                                      # (c, hw)
        # Global average pool: per-channel lane-axis reduce.
        mean = jnp.sum(x, axis=-1, keepdims=True) * inv_hw                    # (c, 1)
        # fc1 (c -> red): VPU multiply + sublane reduce over c.
        z1 = jnp.sum(w1t_ref[...] * mean, axis=0, keepdims=True) + b1_ref[...]   # (1, red)
        z1 = jnp.maximum(z1, 0.0)
        # fc2 (red -> c): VPU multiply + lane reduce over red.
        g1 = jax.nn.sigmoid(
            jnp.sum(w2_ref[...] * z1, axis=-1, keepdims=True) + b2_ref[...])     # (c, 1)
        # Spatial gate: 1x1 conv over channels = sublane reduce over c.
        z2 = jnp.sum(w3_ref[...] * x, axis=0, keepdims=True) + b3_ref[0, 0]      # (1, hw)
        g2 = jax.nn.sigmoid(z2)
        # g1 broadcasts along lanes, g2 along sublanes.
        o_ref[0] = (x * (g1 + g2)).astype(o_ref.dtype)

    return kernel


@functools.lru_cache(maxsize=None)
def _build_fused(n, c, hw, red, dtype_name):
    dtype = jnp.dtype(dtype_name)
    kernel = _make_fused_kernel(1.0 / float(hw))
    call = pl.pallas_call(
        kernel,
        out_shape=jax.ShapeDtypeStruct((n, c, hw), dtype),
        grid_spec=pltpu.PrefetchScalarGridSpec(
            num_scalar_prefetch=0,
            grid=(n,),
            in_specs=[
                pl.BlockSpec((1, c, hw), lambda b: (b, 0, 0)),   # x slab (stream dtype)
                pl.BlockSpec((c, red), lambda b: (0, 0)),        # fc1 weight^T
                pl.BlockSpec((1, red), lambda b: (0, 0)),        # fc1 bias
                pl.BlockSpec((c, red), lambda b: (0, 0)),        # fc2 weight
                pl.BlockSpec((c, 1), lambda b: (0, 0)),          # fc2 bias
                pl.BlockSpec((c, 1), lambda b: (0, 0)),          # fc3 weight
                pl.BlockSpec((1, 1), lambda b: (0, 0)),          # fc3 bias
            ],
            out_specs=pl.BlockSpec((1, c, hw), lambda b: (b, 0, 0)),
        ),
        compiler_params=pltpu.CompilerParams(
            dimension_semantics=("parallel",),
            vmem_limit_bytes=_VMEM_LIMIT),
    )
    return jax.jit(call)


# ---------------------------------------------------------------------------
# Two-pass fallback, kernel 1: tiled GAP reduction fused with fc1/relu/fc2/sigmoid.
# ---------------------------------------------------------------------------
def _make_gap_kernel(hw, bhw, inv_hw):
    need_mask = (hw % bhw) != 0

    def kernel(x_ref, w1t_ref, b1_ref, w2_ref, b2_ref, g1_ref, acc_ref):
        r = pl.program_id(1)

        @pl.when(r == 0)
        def _():
            acc_ref[...] = jnp.zeros_like(acc_ref)

        x = x_ref[0].astype(jnp.float32)                                  # (c, bhw)
        if need_mask:
            # Mask out-of-bounds tail lanes of the last (partial) block.
            lane = jax.lax.broadcasted_iota(jnp.int32, x.shape, 1)
            x = jnp.where(lane < (hw - r * bhw), x, 0.0)
        acc_ref[...] += jnp.sum(x, axis=-1, keepdims=True)                # (c, 1)

        @pl.when(r == pl.num_programs(1) - 1)
        def _():
            mean = acc_ref[...] * inv_hw                                  # (c, 1)
            z1 = jnp.sum(w1t_ref[...] * mean, axis=0, keepdims=True) + b1_ref[...]
            z1 = jnp.maximum(z1, 0.0)                                     # (1, red)
            g1 = jnp.sum(w2_ref[...] * z1, axis=-1, keepdims=True) + b2_ref[...]
            g1_ref[0] = jax.nn.sigmoid(g1)                                # (c, 1)

    return kernel


@functools.lru_cache(maxsize=None)
def _build_channel_gate(n, c, hw, red, bhw, dtype_name):
    kernel = _make_gap_kernel(hw, bhw, 1.0 / float(hw))
    call = pl.pallas_call(
        kernel,
        out_shape=jax.ShapeDtypeStruct((n, c, 1), jnp.float32),
        grid_spec=pltpu.PrefetchScalarGridSpec(
            num_scalar_prefetch=0,
            grid=(n, pl.cdiv(hw, bhw)),
            in_specs=[
                pl.BlockSpec((1, c, bhw), lambda b, r: (b, 0, r)),   # x tile
                pl.BlockSpec((c, red), lambda b, r: (0, 0)),         # fc1 weight^T
                pl.BlockSpec((1, red), lambda b, r: (0, 0)),         # fc1 bias
                pl.BlockSpec((c, red), lambda b, r: (0, 0)),         # fc2 weight
                pl.BlockSpec((c, 1), lambda b, r: (0, 0)),           # fc2 bias
            ],
            out_specs=pl.BlockSpec((1, c, 1), lambda b, r: (b, 0, 0)),
            scratch_shapes=[pltpu.VMEM((c, 1), jnp.float32)],
        ),
        compiler_params=pltpu.CompilerParams(
            dimension_semantics=("parallel", "arbitrary"),
            vmem_limit_bytes=_VMEM_LIMIT),
    )
    return jax.jit(call)


# ---------------------------------------------------------------------------
# Two-pass fallback, kernel 2: spatial gate fused with the scSE combine.
# ---------------------------------------------------------------------------
def _combine_kernel(x_ref, g1_ref, w3_ref, b3_ref, o_ref):
    x = x_ref[0].astype(jnp.float32)                                      # (c, bhw)
    z2 = jnp.sum(w3_ref[...] * x, axis=0, keepdims=True) + b3_ref[0, 0]   # (1, bhw)
    g2 = jax.nn.sigmoid(z2)
    # Tail lanes of a partial last block need no mask: results are per-element
    # and Pallas bounds-clips the output write.
    o_ref[0] = (x * (g1_ref[0] + g2)).astype(o_ref.dtype)


@functools.lru_cache(maxsize=None)
def _build_combine(n, c, hw, bhw, dtype_name):
    dtype = jnp.dtype(dtype_name)
    call = pl.pallas_call(
        _combine_kernel,
        out_shape=jax.ShapeDtypeStruct((n, c, hw), dtype),
        grid_spec=pltpu.PrefetchScalarGridSpec(
            num_scalar_prefetch=0,
            grid=(n, pl.cdiv(hw, bhw)),
            in_specs=[
                pl.BlockSpec((1, c, bhw), lambda b, r: (b, 0, r)),   # x tile
                pl.BlockSpec((1, c, 1), lambda b, r: (b, 0, 0)),     # g1 (per batch)
                pl.BlockSpec((c, 1), lambda b, r: (0, 0)),           # fc3 weight
                pl.BlockSpec((1, 1), lambda b, r: (0, 0)),           # fc3 bias
            ],
            out_specs=pl.BlockSpec((1, c, bhw), lambda b, r: (b, 0, r)),
        ),
        compiler_params=pltpu.CompilerParams(
            dimension_semantics=("parallel", "parallel"),
            vmem_limit_bytes=_VMEM_LIMIT),
    )
    return jax.jit(call)


# ---------------------------------------------------------------------------
# Public wrapper: NCHW in / NCHW out (same dtype as the input), mirroring the
# PyTorch module.  No transposes, no padding, no forced f32 upcast in HBM.
# ---------------------------------------------------------------------------
def spatial_channel_se(x_nchw, params, *, force_two_pass=False, block_hw=None):
    n, c, h, w = x_nchw.shape
    hw = h * w
    red = params["fc1_w"].shape[0]

    # Free view (no data movement): collapse spatial dims so channels sit on
    # the sublane axis and h*w on the fast lane axis.
    x = x_nchw.reshape(n, c, hw)

    w1t = jnp.asarray(params["fc1_w"], jnp.float32).T            # (c, red)
    b1 = jnp.asarray(params["fc1_b"], jnp.float32).reshape(1, red)
    w2 = jnp.asarray(params["fc2_w"], jnp.float32)               # (c, red)
    b2 = jnp.asarray(params["fc2_b"], jnp.float32).reshape(c, 1)
    w3 = jnp.asarray(params["fc3_w"], jnp.float32).reshape(c, 1)
    b3 = jnp.asarray(params["fc3_b"], jnp.float32).reshape(1, 1)

    dtype_name = jnp.dtype(x.dtype).name
    if (not force_two_pass) and c * hw * 4 <= _FUSED_SLAB_BYTES:
        out = _build_fused(n, c, hw, red, dtype_name)(x, w1t, b1, w2, b2, w3, b3)
    else:
        bhw = block_hw if block_hw is not None else _choose_block_hw(hw, c)
        bhw = min(bhw, hw)
        g1 = _build_channel_gate(n, c, hw, red, bhw, dtype_name)(x, w1t, b1, w2, b2)
        out = _build_combine(n, c, hw, bhw, dtype_name)(x, g1, w3, b3)
    return out.reshape(n, c, h, w)


# ---------------------------------------------------------------------------
# Deterministic parameters (PyTorch Conv2d-style shapes) + plain-JAX reference.
# ---------------------------------------------------------------------------
def init_params(key, channels, reduction=16):
    k1, k2, k3, k4, k5, k6 = jax.random.split(key, 6)

    def conv1x1(kw, kb, cin, cout):
        bound = 1.0 / (cin ** 0.5)
        w = jax.random.uniform(kw, (cout, cin), jnp.float32, -bound, bound)
        b = jax.random.uniform(kb, (cout,), jnp.float32, -bound, bound)
        return w, b

    fc1_w, fc1_b = conv1x1(k1, k2, channels, reduction)   # (red, c), (red,)
    fc2_w, fc2_b = conv1x1(k3, k4, reduction, channels)   # (c, red), (c,)
    fc3_w, fc3_b = conv1x1(k5, k6, channels, 1)           # (1, c), (1,)
    return {"fc1_w": fc1_w, "fc1_b": fc1_b,
            "fc2_w": fc2_w, "fc2_b": fc2_b,
            "fc3_w": fc3_w, "fc3_b": fc3_b}


def spatial_channel_se_reference(x, params):
    """Plain-JAX NCHW reference matching the PyTorch module semantics."""
    x = x.astype(jnp.float32)
    z1 = jnp.mean(x, axis=(2, 3))                                        # (n, c)
    z1 = jnp.maximum(z1 @ params["fc1_w"].T + params["fc1_b"], 0.0)      # (n, red)
    g1 = jax.nn.sigmoid(z1 @ params["fc2_w"].T + params["fc2_b"])        # (n, c)
    z2 = jnp.einsum("nchw,oc->nohw", x, params["fc3_w"]) \
        + params["fc3_b"][None, :, None, None]
    g2 = jax.nn.sigmoid(z2)                                              # (n, 1, h, w)
    return g1[:, :, None, None] * x + g2 * x


if __name__ == "__main__":
    key = jax.random.PRNGKey(0)
    kx, kp = jax.random.split(key)
    n, c, h, w = 2, 64, 16, 16
    x = jax.random.normal(kx, (n, c, h, w), dtype=jnp.float32)
    params = init_params(kp, channels=c, reduction=16)
    ref = spatial_channel_se_reference(x, params)

    # Fused single-pass path (typical scSE feature-map sizes).
    out = jax.block_until_ready(spatial_channel_se(x, params))
    assert out.shape == (n, c, h, w) and out.dtype == x.dtype
    assert bool(jnp.all(jnp.isfinite(out)))
    err = float(jnp.max(jnp.abs(out - ref)))
    assert bool(jnp.allclose(out, ref, rtol=1e-4, atol=1e-4)), err

    # Two-pass streaming fallback (large-resolution path).
    out2 = jax.block_until_ready(spatial_channel_se(x, params, force_two_pass=True))
    err2 = float(jnp.max(jnp.abs(out2 - ref)))
    assert bool(jnp.allclose(out2, ref, rtol=1e-4, atol=1e-4)), err2

    # Non-multiple-of-128 spatial extent exercises the masked GAP tail and the
    # bounds-clipped combine stores (hw = 300, tile = 128 -> partial last tile).
    x3 = jax.random.normal(kx, (1, c, 15, 20), dtype=jnp.float32)
    ref3 = spatial_channel_se_reference(x3, params)
    out3 = jax.block_until_ready(
        spatial_channel_se(x3, params, force_two_pass=True, block_hw=128))
    err3 = float(jnp.max(jnp.abs(out3 - ref3)))
    assert bool(jnp.allclose(out3, ref3, rtol=1e-4, atol=1e-4)), err3

    print("KERNEL_OK")
</pallas_src>

<mosaic_0001>
module attributes {stable_mosaic.version = 11 : i64} {
  func.func @kernel(%arg0: i32, %arg1: memref<1x64x256xf32, #tpu.memory_space<vmem>>, %arg2: memref<64x16xf32, #tpu.memory_space<vmem>>, %arg3: memref<1x16xf32, #tpu.memory_space<vmem>>, %arg4: memref<64x16xf32, #tpu.memory_space<vmem>>, %arg5: memref<64x1xf32, #tpu.memory_space<vmem>>, %arg6: memref<64x1xf32, #tpu.memory_space<vmem>>, %arg7: memref<1x1xf32, #tpu.memory_space<vmem>>, %arg8: memref<1x64x256xf32, #tpu.memory_space<vmem>>) attributes {dimension_semantics = [#tpu.dimension_semantics<parallel>], iteration_bounds = array<i64: 2>, scalar_prefetch = 0 : i64, scratch_operands = 0 : i64, tpu.core_type = #tpu.core_type<tc>, window_params = [{transform_indices = @transform_0, window_bounds = array<i64: 1, 64, 256>}, {pipeline_mode = #tpu.pipeline_mode<synchronous>, transform_indices = @transform_1, window_bounds = array<i64: 64, 16>}, {pipeline_mode = #tpu.pipeline_mode<synchronous>, transform_indices = @transform_2, window_bounds = array<i64: 1, 16>}, {pipeline_mode = #tpu.pipeline_mode<synchronous>, transform_indices = @transform_3, window_bounds = array<i64: 64, 16>}, {pipeline_mode = #tpu.pipeline_mode<synchronous>, transform_indices = @transform_4, window_bounds = array<i64: 64, 1>}, {pipeline_mode = #tpu.pipeline_mode<synchronous>, transform_indices = @transform_5, window_bounds = array<i64: 64, 1>}, {pipeline_mode = #tpu.pipeline_mode<synchronous>, transform_indices = @transform_6, window_bounds = array<i64: 1, 1>}, {transform_indices = @transform_7, window_bounds = array<i64: 1, 64, 256>}]} {
    %c0 = arith.constant 0 : index
    %c0_0 = arith.constant 0 : index
    %c0_1 = arith.constant 0 : index
    %0 = vector.load %arg1[%c0, %c0_0, %c0_1] : memref<1x64x256xf32, #tpu.memory_space<vmem>>, vector<1x64x256xf32>
    %1 = vector.shape_cast %0 : vector<1x64x256xf32> to vector<64x256xf32>
    %cst = arith.constant dense<0.000000e+00> : vector<64xf32>
    %2 = vector.multi_reduction <add>, %1, %cst [1] : vector<64x256xf32> to vector<64xf32>
    %3 = vector.shape_cast %2 : vector<64xf32> to vector<64x1xf32>
    %cst_2 = arith.constant 3.906250e-03 : f32
    %4 = vector.broadcast %cst_2 : f32 to vector<64x1xf32>
    %5 = arith.mulf %3, %4 : vector<64x1xf32>
    %c0_3 = arith.constant 0 : index
    %c0_4 = arith.constant 0 : index
    %6 = vector.load %arg2[%c0_3, %c0_4] : memref<64x16xf32, #tpu.memory_space<vmem>>, vector<64x16xf32>
    %7 = vector.broadcast %5 : vector<64x1xf32> to vector<64x16xf32>
    %8 = arith.mulf %6, %7 : vector<64x16xf32>
    %cst_5 = arith.constant dense<0.000000e+00> : vector<16xf32>
    %9 = vector.multi_reduction <add>, %8, %cst_5 [0] : vector<64x16xf32> to vector<16xf32>
    %10 = vector.shape_cast %9 : vector<16xf32> to vector<1x16xf32>
    %c0_6 = arith.constant 0 : index
    %c0_7 = arith.constant 0 : index
    %11 = vector.load %arg3[%c0_6, %c0_7] : memref<1x16xf32, #tpu.memory_space<vmem>>, vector<1x16xf32>
    %12 = arith.addf %10, %11 : vector<1x16xf32>
    %cst_8 = arith.constant 0.000000e+00 : f32
    %13 = vector.broadcast %cst_8 : f32 to vector<1x16xf32>
    %14 = arith.maximumf %12, %13 : vector<1x16xf32>
    %c0_9 = arith.constant 0 : index
    %c0_10 = arith.constant 0 : index
    %15 = vector.load %arg4[%c0_9, %c0_10] : memref<64x16xf32, #tpu.memory_space<vmem>>, vector<64x16xf32>
    %16 = vector.broadcast %14 : vector<1x16xf32> to vector<64x16xf32>
    %17 = arith.mulf %15, %16 : vector<64x16xf32>
    %cst_11 = arith.constant dense<0.000000e+00> : vector<64xf32>
    %18 = vector.multi_reduction <add>, %17, %cst_11 [1] : vector<64x16xf32> to vector<64xf32>
    %19 = vector.shape_cast %18 : vector<64xf32> to vector<64x1xf32>
    %c0_12 = arith.constant 0 : index
    %c0_13 = arith.constant 0 : index
    %20 = vector.load %arg5[%c0_12, %c0_13] : memref<64x1xf32, #tpu.memory_space<vmem>>, vector<64x1xf32>
    %21 = arith.addf %19, %20 : vector<64x1xf32>
    %22 = arith.negf %21 : vector<64x1xf32>
    %23 = math.exp %22 : vector<64x1xf32>
    %cst_14 = arith.constant 1.000000e+00 : f32
    %24 = vector.broadcast %cst_14 : f32 to vector<64x1xf32>
    %25 = arith.addf %24, %23 : vector<64x1xf32>
    %26 = arith.divf %24, %25 : vector<64x1xf32>
    %c0_15 = arith.constant 0 : index
    %c0_16 = arith.constant 0 : index
    %27 = vector.load %arg6[%c0_15, %c0_16] : memref<64x1xf32, #tpu.memory_space<vmem>>, vector<64x1xf32>
    %28 = vector.broadcast %27 : vector<64x1xf32> to vector<64x256xf32>
    %29 = arith.mulf %28, %1 : vector<64x256xf32>
    %cst_17 = arith.constant dense<0.000000e+00> : vector<256xf32>
    %30 = vector.multi_reduction <add>, %29, %cst_17 [0] : vector<64x256xf32> to vector<256xf32>
    %31 = vector.shape_cast %30 : vector<256xf32> to vector<1x256xf32>
    %c0_18 = arith.constant 0 : index
    %c0_19 = arith.constant 0 : index
    %32 = vector.load %arg7[%c0_18, %c0_19] : memref<1x1xf32, #tpu.memory_space<vmem>>, vector<1x1xf32>
    %33 = vector.extract %32[0, 0] : f32 from vector<1x1xf32>
    %34 = vector.broadcast %33 : f32 to vector<1x256xf32>
    %35 = arith.addf %31, %34 : vector<1x256xf32>
    %36 = arith.negf %35 : vector<1x256xf32>
    %37 = math.exp %36 : vector<1x256xf32>
    %cst_20 = arith.constant 1.000000e+00 : f32
    %38 = vector.broadcast %cst_20 : f32 to vector<1x256xf32>
    %39 = arith.addf %38, %37 : vector<1x256xf32>
    %40 = arith.divf %38, %39 : vector<1x256xf32>
    %41 = vector.broadcast %26 : vector<64x1xf32> to vector<64x256xf32>
    %42 = vector.broadcast %40 : vector<1x256xf32> to vector<64x256xf32>
    %43 = arith.addf %41, %42 : vector<64x256xf32>
    %44 = arith.mulf %1, %43 : vector<64x256xf32>
    %c0_21 = arith.constant 0 : index
    %c0_22 = arith.constant 0 : index
    %c0_23 = arith.constant 0 : index
    %45 = vector.load %arg8[%c0_21, %c0_22, %c0_23] : memref<1x64x256xf32, #tpu.memory_space<vmem>>, vector<1x64x256xf32>
    %46 = vector.shape_cast %45 : vector<1x64x256xf32> to vector<64x256xf32>
    %47 = vector.shape_cast %44 : vector<64x256xf32> to vector<1x64x256xf32>
    tpu.vector_store %arg8[%c0_21, %c0_22, %c0_23], %47 {strides = array<i32>} : memref<1x64x256xf32, #tpu.memory_space<vmem>>, vector<1x64x256xf32>,
    return
  }
  func.func @transform_0(%arg0: i32) -> (i32, i32, i32) {
    %c0_i32 = arith.constant 0 : i32
    %c0_i32_0 = arith.constant 0 : i32
    %c0_i32_1 = arith.constant 0 : i32
    return %arg0, %c0_i32, %c0_i32_0 : i32, i32, i32
  }
  func.func @transform_1(%arg0: i32) -> (i32, i32) {
    %c0_i32 = arith.constant 0 : i32
    %c0_i32_0 = arith.constant 0 : i32
    %c0_i32_1 = arith.constant 0 : i32
    return %c0_i32, %c0_i32_0 : i32, i32
  }
  func.func @transform_2(%arg0: i32) -> (i32, i32) {
    %c0_i32 = arith.constant 0 : i32
    %c0_i32_0 = arith.constant 0 : i32
    %c0_i32_1 = arith.constant 0 : i32
    return %c0_i32, %c0_i32_0 : i32, i32
  }
  func.func @transform_3(%arg0: i32) -> (i32, i32) {
    %c0_i32 = arith.constant 0 : i32
    %c0_i32_0 = arith.constant 0 : i32
    %c0_i32_1 = arith.constant 0 : i32
    return %c0_i32, %c0_i32_0 : i32, i32
  }
  func.func @transform_4(%arg0: i32) -> (i32, i32) {
    %c0_i32 = arith.constant 0 : i32
    %c0_i32_0 = arith.constant 0 : i32
    %c0_i32_1 = arith.constant 0 : i32
    return %c0_i32, %c0_i32_0 : i32, i32
  }
  func.func @transform_5(%arg0: i32) -> (i32, i32) {
    %c0_i32 = arith.constant 0 : i32
    %c0_i32_0 = arith.constant 0 : i32
    %c0_i32_1 = arith.constant 0 : i32
    return %c0_i32, %c0_i32_0 : i32, i32
  }
  func.func @transform_6(%arg0: i32) -> (i32, i32) {
    %c0_i32 = arith.constant 0 : i32
    %c0_i32_0 = arith.constant 0 : i32
    %c0_i32_1 = arith.constant 0 : i32
    return %c0_i32, %c0_i32_0 : i32, i32
  }
  func.func @transform_7(%arg0: i32) -> (i32, i32, i32) {
    %c0_i32 = arith.constant 0 : i32
    %c0_i32_0 = arith.constant 0 : i32
    %c0_i32_1 = arith.constant 0 : i32
    return %arg0, %c0_i32, %c0_i32_0 : i32, i32, i32
  }
}

</mosaic_0001>

<bundles_post_ra>
// kernel: tpu_custom_call.1
= control target key start
LH: loop header
LB: loop body
LE: loop exit
PB: predicated region body
PF: predicated region fallthrough
CT: control target
= control target key end

     0   :  { %s1289_s0 = inlined_call_operand.vmem [shape: f32[2,64,256], index: 0, kind: input, shape index: {}]   ;;  %s1290_s1 = inlined_call_operand.vmem [shape: f32[64,16], index: 1, kind: input, shape index: {}]   ;;  %s1291_s2 = inlined_call_operand.vmem [shape: f32[1,16], index: 2, kind: input, shape index: {}]   ;;  %s1292_s3 = inlined_call_operand.vmem [shape: f32[64,16], index: 3, kind: input, shape index: {}]   ;;  %s1293_s4 = inlined_call_operand.vmem [shape: f32[64,1], index: 4, kind: input, shape index: {}]   ;;  %s1294_s5 = inlined_call_operand.vmem [shape: f32[64,1], index: 5, kind: input, shape index: {}]   ;;  %s1295_s6 = inlined_call_operand.<no memory space> [shape: f32[1,1], index: 6, kind: input, shape index: {}]   ;;  %s1296_s7 = inlined_call_operand.hbm [shape: f32[2,64,256], index: 7, kind: output, shape index: {}]  }
   0x1   :  { %v12_v0 = vstv %s1295_s6 }
   0x2   :  { %13 = vst [vmem:[#allocation2] sm:$0x1] %v12_v0 }
   0x3   :  { %14 = vsyncpa [#allocation4], 0 }
   0x4   :  { %16 = vsyncpa [#allocation4 + $0x1], 0  ;;  %s968_s26 = smov 0   ;;  %s970_s27 = smov 0  }
   0x5   :  { %s972_s28 = smov 0   ;;  %s974_s29 = smov 0  }
   0x6 LB: > { %s989_s6 = sadd.s32 4294967295, %s919_s29   ;;  %s747_s30 = sadd.s32 4294967294, %s919_s29   ;;  %s919_s29 = sphi %s974_s29, %s1302_s29   ;;  %s915_s28 = sphi %s972_s28, %s1301_s28   ;;  %s911_s27 = sphi %s970_s27, %s1300_s27   ;;  %s907_s26 = sphi %s968_s26, %s1299_s26  }
   0x7   : > { %s993_s8 = sadd.s32 1, %s919_s29   ;;  %s181_s9 = sadd.s32 1, %s915_s28 }
   0x8   : > { %s178_s10 = ssub.s32 %s919_s29, %s993_s8  ;;  %p191_p0 = scmp.ne.s32.totalorder %s915_s28, %s911_s27 }
   0x9   : > { %p179_p1 = scmp.eq.s32.totalorder %s178_s10, 0  ;;  %p192_p2 = scmp.eq.s32.totalorder %s989_s6, 1 }
   0xa   : > { %p197_p3 = scmp.ne.s32.totalorder %s911_s27, %s907_s26  ;;  %p198_p4 = scmp.eq.s32.totalorder %s747_s30, 1 }
   0xb   : > { %s1004_s11 = scalar_select %p179_p1, %s915_s28, %s181_s9  }
   0xc   : > { %p1006_p5 = por %p192_p2, %p191_p0  ;;  %p1010_p6 = por %p198_p4, %p197_p3 }
   0xd   : > { %p750_p7 = scmp.ge.s32.totalorder %s919_s29, 1  ;;  %p242_p8 = scmp.lt.s32.totalorder %s919_s29, 3 }
   0xf   : > { %p243_p9 = pnand %p750_p7, %p242_p8 }
  0x10   : > { %p274_p10 = scmp.lt.s32.totalorder (!%p243_p9), %s989_s6, 1  ;;  %v921_v25 = vmov (!%p243_p9), 0   ;;  %v327_v29 = vld [vmem:[%s1290_s1] sm:$0xff] (!%p243_p9)  ;;  %v329_v31 = vld [vmem:[%s1290_s1 + $0x10] sm:$0xff] (!%p243_p9)  ;;  %v328_v32 = vld [vmem:[%s1290_s1 + $0x8] sm:$0xff] (!%p243_p9)  ;;  %vm343_vm0 = vcmask (!%p243_p9), 130048  }
  0x11   : > { %246 = sbr.rel (%p243_p9) target bundleno = 595 (0x253), region = 48  ;;  %816 = vset.pattern.permute.xlu1 (!%p243_p9), %v921_v25  ;;  %815 = vset.pattern.permute.xlu0 (!%p243_p9), %v921_v25  ;;  %v330_v36 = vld [vmem:[%s1290_s1 + $0x18] sm:$0xff] (!%p243_p9)  ;;  %v331_v42 = vld [vmem:[%s1290_s1 + $0x20] sm:$0xff] (!%p243_p9)  ;;  %v332_v47 = vld [vmem:[%s1290_s1 + $0x28] sm:$0xff] (!%p243_p9)  ;;  %s271_s30 = sand.u32 (!%p243_p9), 1, %s911_s27  }
  0x12   : > { %v333_v56 = vld [vmem:[%s1290_s1 + $0x30] sm:$0xff] (!%p243_p9)  ;;  %v334_v60 = vld [vmem:[%s1290_s1 + $0x38] sm:$0xff] (!%p243_p9)  ;;  %s751_s9 = sshll.u32 (!%p243_p9), %s271_s30, 7  ;;  %s922_s20 = smov (!%p243_p9), [#allocation3]  }
  0x13   : > { %s1207_s10 = scalar_lea.vmem (!%p243_p9), [#allocation3], %s751_s9  ;;  %s861_s21 = sshll.u32 (!%p243_p9), %s922_s20, 4  ;;  %s862_s21 = int_to_ptr.vmem [resolvable:$false] %s861_s21 }
  0x14   : > { %s863_s22 = scalar_lea.vmem (!%p243_p9), %s862_s21, 4096 }
  0x18   : > { %s275_s14 = scalar_select %p274_p10, %s989_s6, 1 }
  0x1a   : > { %s769_s15 = sshll.u32 %s275_s14, 7  ;;  %s770_s14 = sshll.u32 %s989_s6, 11 }
  0x1b   : > { %s278_s18 = scalar_lea.vmem %s1289_s0, %s769_s15  ;;  %s685_s15 = sshll.u32 %s1207_s10, 4  ;;  %s1240_s15 = int_to_ptr.vmem [resolvable:$true] %s685_s15 }
  0x1c   : > { %v1021_v1 = vld [vmem:[%s278_s18] sm:$0xff]  ;;  %v1023_v2 = vld [vmem:[%s278_s18 + $0x8] sm:$0xff]  ;;  %v1031_v6 = vld [vmem:[%s278_s18 + $0x10] sm:$0xff]  ;;  %s1248_s6 = scalar_lea.sflag [#allocation4], %s271_s30  ;;  %s857_s19 = scalar_lea.vmem %s1240_s15, 2048 }
  0x1d   : > { %v1025_v3 = vld [vmem:[%s278_s18 + $0x20] sm:$0xff]  ;;  %v295_v4 = vadd.f32 %v1023_v2, %v1021_v1  ;;  %v1029_v5 = vld [vmem:[%s278_s18 + $0x28] sm:$0xff]  ;;  %v1033_v7 = vld [vmem:[%s278_s18 + $0x18] sm:$0xff]  ;;  %p858_p11 = scmp.ne.s32.totalorder %s1240_s15, %s857_s19  ;;  %p864_p0 = scmp.lt.s32.totalorder %s1240_s15, %s862_s21 }
  0x1e   : > { %v301_v8 = vadd.f32 %v1029_v5, %v1025_v3  ;;  %v1037_v9 = vld [vmem:[%s278_s18 + $0x30] sm:$0xff]  ;;  %v1039_v10 = vld [vmem:[%s278_s18 + $0x38] sm:$0xff]  ;;  %v298_v11 = vadd.f32 %v1033_v7, %v1031_v6  ;;  %v1045_v13 = vld [vmem:[%s278_s18 + $0x40] sm:$0xff]  ;;  %p865_p1 = scmp.lt.s32.totalorder %s863_s22, %s857_s19 }
  0x1f   : > { %296 = vadd.xlane.f32.xlu0 %v295_v4  ;;  %v304_v12 = vadd.f32 %v1039_v10, %v1037_v9  ;;  %v1047_v14 = vld [vmem:[%s278_s18 + $0x48] sm:$0xff]  ;;  %v1049_v15 = vld [vmem:[%s278_s18 + $0x50] sm:$0xff]  ;;  %v1051_v16 = vld [vmem:[%s278_s18 + $0x58] sm:$0xff]  ;;  %p859_p12 = pnand %p858_p11, %p1006_p5 }
  0x20   : > { %302 = vadd.xlane.f32.xlu1 %v301_v8  ;;  %v307_v17 = vadd.f32 %v1047_v14, %v1045_v13  ;;  %v310_v18 = vadd.f32 %v1051_v16, %v1049_v15  ;;  %v1057_v19 = vld [vmem:[%s278_s18 + $0x60] sm:$0xff]  ;;  %v1059_v20 = vld [vmem:[%s278_s18 + $0x68] sm:$0xff]  ;;  %v1061_v21 = vld [vmem:[%s278_s18 + $0x70] sm:$0xff]  ;;  %p866_p2 = por %p865_p1, %p864_p0 }
  0x21   : > { %v1063_v22 = vld [vmem:[%s278_s18 + $0x78] sm:$0xff]  ;;  %v313_v23 = vadd.f32 %v1059_v20, %v1057_v19  ;;  %s1238_s18 = scalar_lea.hbm %s1296_s7, %s770_s14  ;;  %p860_p13 = pneg %p859_p12 }
  0x22   : > { %v316_v24 = vadd.f32 %v1063_v22, %v1061_v21 }
  0x23   : > { %299 = vadd.xlane.f32.xlu0 %v298_v11  ;;  %p867_p3 = pnand %p866_p2, %p860_p13 }
  0x24   : > { %305 = vadd.xlane.f32.xlu1 %v304_v12 }
  0x27   : > { %308 = vadd.xlane.f32.xlu0 %v307_v17 }
  0x28   : > { %311 = vadd.xlane.f32.xlu1 %v310_v18 }
  0x2b   : > { %314 = vadd.xlane.f32.xlu0 %v313_v23 }
  0x2c   : > { %317 = vadd.xlane.f32.xlu1 %v316_v24 }
  0xac   : > { %v297_v26 = vpop.xlane.xlu0 %296 }
  0xad   : > { %v319_v27 = vmul.f32 0.00390625, %v297_v26  ;;  %v303_v28 = vpop.xlane.xlu1 %302 }
  0xae   : > { %v321_v30 = vmul.f32 0.00390625, %v303_v28 }
  0xaf   : > { %v335_v34 = vmul.f32 %v327_v29, %v319_v27  ;;  %v376_v27 = vlaneseq }
  0xb0   : > { %v300_v33 = vpop.xlane.xlu0 %299  ;;  %v337_v39 = vmul.f32 %v329_v31, %v321_v30 }
  0xb1   : > { %v320_v35 = vmul.f32 0.00390625, %v300_v33  ;;  %v306_v37 = vpop.xlane.xlu1 %305  ;;  %v344_v44 = vsel %vm343_vm0, %v335_v34, 0.0  ;;  %v377_v30 = vshrl.u32 %v376_v27, 7 }
  0xb2   : > { %v322_v38 = vmul.f32 0.00390625, %v306_v37  ;;  %v347_v51 = vsel %vm343_vm0, %v337_v39, 0.0  ;;  %v369_v37 = vld [vmem:[%s1292_s3 + $0x8] sm:$0xff] }
  0xb3   : > { %v336_v40 = vmul.f32 %v328_v32, %v320_v35  ;;  %v365_v32 = vld [vmem:[%s1291_s2] sm:$0x1]  ;;  %v378_v34 = vsub.s32 0, %v377_v30  ;;  %v414_v30 = vld [vmem:[%s1293_s4 + $0x10] sm:$0xff] }
  0xb4   : > { %v338_v41 = vmul.f32 %v330_v36, %v322_v38  ;;  %v309_v43 = vpop.xlane.xlu0 %308  ;;  %v368_v38 = vld [vmem:[%s1292_s3] sm:$0xff] }
  0xb5   : > { %v345_v45 = vsel %vm343_vm0, %v336_v40, 0.0  ;;  %v323_v46 = vmul.f32 0.00390625, %v309_v43  ;;  %v312_v48 = vpop.xlane.xlu1 %311  ;;  %v371_v40 = vld [vmem:[%s1292_s3 + $0x18] sm:$0xff] }
  0xb6   : > { %v346_v49 = vadd.f32 %v345_v45, %v344_v44  ;;  %v324_v50 = vmul.f32 0.00390625, %v312_v48  ;;  %v349_v52 = vsel %vm343_vm0, %v338_v41, 0.0  ;;  %v370_v41 = vld [vmem:[%s1292_s3 + $0x10] sm:$0xff]  ;;  %v373_v48 = vld [vmem:[%s1292_s3 + $0x28] sm:$0xff] }
  0xb7   : > { %v339_v53 = vmul.f32 %v331_v42, %v323_v46 }
  0xb8   : > { %v348_v54 = vadd.f32 %v347_v51, %v346_v49  ;;  %v340_v55 = vmul.f32 %v332_v47, %v324_v50  ;;  %v315_v57 = vpop.xlane.xlu0 %314  ;;  %v372_v49 = vld [vmem:[%s1292_s3 + $0x20] sm:$0xff] }
  0xb9   : > { %v351_v58 = vsel %vm343_vm0, %v339_v53, 0.0  ;;  %v325_v59 = vmul.f32 0.00390625, %v315_v57  ;;  %v318_v61 = vpop.xlane.xlu1 %317 }
  0xba   : > { %v350_v62 = vadd.f32 %v349_v52, %v348_v54  ;;  %v326_v63 = vmul.f32 0.00390625, %v318_v61  ;;  %v353_v0 = vsel %vm343_vm0, %v340_v55, 0.0  ;;  %v374_v54 = vld [vmem:[%s1292_s3 + $0x30] sm:$0xff]  ;;  %v375_v61 = vld [vmem:[%s1292_s3 + $0x38] sm:$0xff] }
  0xbb   : > { %v341_v4 = vmul.f32 %v333_v56, %v325_v59  ;;  %v477_v59 = vld [vmem:[%s1294_s5 + $0x8] sm:$0xff] }
  0xbc   : > { %v352_v8 = vadd.f32 %v351_v58, %v350_v62  ;;  %v342_v11 = vmul.f32 %v334_v60, %v326_v63  ;;  %v476_v60 = vld [vmem:[%s1294_s5] sm:$0xff] }
  0xbd   : > { %v355_v12 = vsel %vm343_vm0, %v341_v4, 0.0  ;;  %v566_v62 = vld [vmem:[#allocation2] sm:$0x1]  ;;  %v478_v4 = vld [vmem:[%s1294_s5 + $0x10] sm:$0xff] }
  0xbe   : > { %v354_v17 = vadd.f32 %v353_v0, %v352_v8  ;;  %v357_v18 = vsel %vm343_vm0, %v342_v11, 0.0  ;;  %771 = vpush %v566_v62  ;;  %v479_v8 = vld [vmem:[%s1294_s5 + $0x18] sm:$0xff]  ;;  %v480_v11 = vld [vmem:[%s1294_s5 + $0x20] sm:$0xff] }
  0xc0   : > { %v356_v23 = vadd.f32 %v355_v12, %v354_v17  ;;  %v481_v12 = vld [vmem:[%s1294_s5 + $0x28] sm:$0xff]  ;;  %v482_v17 = vld [vmem:[%s1294_s5 + $0x30] sm:$0xff] }
  0xc2   : > { %v358_v24 = vadd.f32 %v357_v18, %v356_v23  ;;  %v483_v18 = vld [vmem:[%s1294_s5 + $0x38] sm:$0xff]  ;;  %v413_v23 = vld [vmem:[%s1293_s4 + $0x8] sm:$0xff] }
  0xc4   : > { %v359_v25 = vrot.slane %v358_v24, 4 }
  0xc6   : > { %v360_v26 = vadd.f32 %v359_v25, %v358_v24  ;;  %v412_v24 = vld [vmem:[%s1293_s4] sm:$0xff] }
  0xc8   : > { %v361_v28 = vrot.slane %v360_v26, 2 }
  0xca   : > { %v362_v29 = vadd.f32 %v361_v28, %v360_v26 }
  0xcc   : > { %v363_v31 = vrot.slane %v362_v29, 1 }
  0xce   : > { %v364_v33 = vadd.f32 %v363_v31, %v362_v29  ;;  %v415_v29 = vld [vmem:[%s1293_s4 + $0x18] sm:$0xff] }
  0xd0   : > { %v366_v35 = vadd.f32 %v365_v32, %v364_v33 }
  0xd2   : > { %v367_v36 = vmax.f32 %v366_v35, 0.0 }
  0xd4   : > { %v379_v39 = vrot.slane %v367_v36, %v378_v34 }
  0xd6   : > { %v381_v42 = vmul.f32 %v379_v39, %v369_v37  ;;  %v380_v43 = vmul.f32 %v379_v39, %v368_v38  ;;  %v383_v46 = vmul.f32 %v379_v39, %v371_v40  ;;  %v382_v47 = vmul.f32 %v379_v39, %v370_v41  ;;  %v417_v37 = vld [vmem:[%s1293_s4 + $0x28] sm:$0xff]  ;;  %v416_v38 = vld [vmem:[%s1293_s4 + $0x20] sm:$0xff] }
  0xd7   : > { %v385_v52 = vmul.f32 %v379_v39, %v373_v48  ;;  %v384_v53 = vmul.f32 %v379_v39, %v372_v49  ;;  %v386_v57 = vmul.f32 %v379_v39, %v374_v54  ;;  %v387_v63 = vmul.f32 %v379_v39, %v375_v61 }
  0xd8   : > { %v391_v44 = vsel %vm343_vm0, %v381_v42, 0.0  ;;  %v388_v45 = vsel %vm343_vm0, %v380_v43, 0.0  ;;  %v397_v50 = vsel %vm343_vm0, %v383_v46, 0.0  ;;  %v394_v51 = vsel %vm343_vm0, %v382_v47, 0.0 }
  0xd9   : > { %392 = vadd.xlane.f32.xlu1 %v391_v44  ;;  %389 = vadd.xlane.f32.xlu0 %v388_v45  ;;  %v403_v55 = vsel %vm343_vm0, %v385_v52, 0.0  ;;  %v400_v56 = vsel %vm343_vm0, %v384_v53, 0.0  ;;  %v406_v58 = vsel %vm343_vm0, %v386_v57, 0.0  ;;  %v409_v0 = vsel %vm343_vm0, %v387_v63, 0.0  ;;  %v418_v45 = vld [vmem:[%s1293_s4 + $0x30] sm:$0xff] }
  0xdd   : > { %398 = vadd.xlane.f32.xlu1 %v397_v50  ;;  %395 = vadd.xlane.f32.xlu0 %v394_v51 }
  0xe1   : > { %404 = vadd.xlane.f32.xlu1 %v403_v55  ;;  %401 = vadd.xlane.f32.xlu0 %v400_v56 }
  0xe5   : > { %407 = vadd.xlane.f32.xlu0 %v406_v58 }
  0xef   : > { %s772_s25 = spop %771 }
  0xf2   : > { %491 = vperm.xlu1 %816, %v477_v59  }
  0xfb   : > { %486 = vperm.xlu0 %815, %v476_v60  }
 0x116   : > { %410 = vadd.xlane.f32.xlu1 %v409_v0 }
 0x127   : > { %496 = vperm.xlu1 %816, %v478_v4  }
 0x12b   : > { %501 = vperm.xlu1 %816, %v479_v8  }
 0x12f   : > { %506 = vperm.xlu1 %816, %v480_v11  }
 0x133   : > { %511 = vperm.xlu1 %816, %v481_v12  }
 0x137   : > { %516 = vperm.xlu1 %816, %v482_v17  }
 0x13b   : > { %521 = vperm.xlu1 %816, %v483_v18  }
 0x166   : > { %v393_v25 = vpop.xlane.xlu1 %392  ;;  %v390_v26 = vpop.xlane.xlu0 %389 }
 0x167   : > { %v421_v27 = vadd.f32 %v413_v23, %v393_v25  ;;  %v420_v28 = vadd.f32 %v412_v24, %v390_v26  ;;  %v419_v25 = vld [vmem:[%s1293_s4 + $0x38] sm:$0xff] }
 0x169   : > { %v755_v31 = vmul.f32 -1.442695, %v421_v27  ;;  %v754_v32 = vmul.f32 -1.442695, %v420_v28 }
 0x16a   : > { %v399_v33 = vpop.xlane.xlu1 %398  ;;  %v396_v34 = vpop.xlane.xlu0 %395 }
 0x16b   : > { %817 = vpow2.f32 %v755_v31  ;;  %v423_v35 = vadd.f32 %v415_v29, %v399_v33  ;;  %v422_v36 = vadd.f32 %v414_v30, %v396_v34 }
 0x16c   : > { %819 = vpow2.f32 %v754_v32 }
 0x16d   : > { %v757_v39 = vmul.f32 -1.442695, %v423_v35  ;;  %v756_v40 = vmul.f32 -1.442695, %v422_v36 }
 0x16e   : > { %v405_v41 = vpop.xlane.xlu1 %404  ;;  %v402_v42 = vpop.xlane.xlu0 %401 }
 0x16f   : > { %821 = vpow2.f32 %v757_v39  ;;  %v425_v43 = vadd.f32 %v417_v37, %v405_v41  ;;  %v424_v44 = vadd.f32 %v416_v38, %v402_v42 }
 0x170   : > { %823 = vpow2.f32 %v756_v40 }
 0x171   : > { %v759_v46 = vmul.f32 -1.442695, %v425_v43  ;;  %v758_v47 = vmul.f32 -1.442695, %v424_v44 }
 0x172   : > { %v408_v48 = vpop.xlane.xlu0 %407  ;;  %v492_v24 = vpop.permute.xlu1 %491 }
 0x173   : > { %825 = vpow2.f32 %v759_v46  ;;  %v426_v49 = vadd.f32 %v418_v45, %v408_v48  ;;  %v526_v38 = vmul.f32 %v492_v24, %v1031_v6  ;;  %v527_v40 = vmul.f32 %v492_v24, %v1033_v7 }
 0x174   : > { %827 = vpow2.f32 %v758_v47 }
 0x175   : > { %v818_v50 = vpop.eup %817  ;;  %v760_v51 = vmul.f32 -1.442695, %v426_v49 }
 0x176   : > { %v820_v52 = vpop.eup %819  ;;  %v453_v53 = vadd.f32 1.0, %v818_v50 }
 0x177   : > { %v452_v54 = vadd.f32 1.0, %v820_v52  ;;  %829 = vpow2.f32 %v760_v51 }
 0x178   : > { %831 = vrcp.f32 %v453_v53 }
 0x179   : > { %v822_v55 = vpop.eup %821  ;;  %833 = vrcp.f32 %v452_v54 }
 0x17a   : > { %v824_v56 = vpop.eup %823  ;;  %v455_v57 = vadd.f32 1.0, %v822_v55  ;;  %v487_v31 = vpop.permute.xlu0 %486 }
 0x17b   : > { %v454_v58 = vadd.f32 1.0, %v824_v56  ;;  %v524_v34 = vmul.f32 %v487_v31, %v1021_v1  ;;  %v525_v35 = vmul.f32 %v487_v31, %v1023_v2 }
 0x17c   : > { %835 = vrcp.f32 %v455_v57 }
 0x17d   : > { %v826_v59 = vpop.eup %825  ;;  %837 = vrcp.f32 %v454_v58  ;;  %v540_v42 = vadd.f32 %v526_v38, %v524_v34  ;;  %v553_v44 = vadd.f32 %v527_v40, %v525_v35 }
 0x17e   : > { %v828_v60 = vpop.eup %827  ;;  %v457_v61 = vadd.f32 1.0, %v826_v59 }
 0x17f   : > { %v456_v62 = vadd.f32 1.0, %v828_v60 }
 0x180   : > { %839 = vrcp.f32 %v457_v61 }
 0x181   : > { %v830_v63 = vpop.eup %829  ;;  %841 = vrcp.f32 %v456_v62 }
 0x182   : > { %v832_v0 = vpop.eup %831  ;;  %v458_v4 = vadd.f32 1.0, %v830_v63 }
 0x183   : > { %v834_v8 = vpop.eup %833  ;;  %590 = vperm.xlu0 %815, %v832_v0  }
 0x184   : > { %843 = vrcp.f32 %v458_v4  ;;  %585 = vperm.xlu1 %816, %v834_v8  }
 0x186   : > { %v836_v11 = vpop.eup %835 }
 0x187   : > { %v838_v12 = vpop.eup %837  ;;  %600 = vperm.xlu0 %815, %v836_v11  }
 0x188   : > { %595 = vperm.xlu1 %816, %v838_v12  }
 0x18a   : > { %v840_v17 = vpop.eup %839 }
 0x18b   : > { %v842_v18 = vpop.eup %841  ;;  %610 = vperm.xlu0 %815, %v840_v17  }
 0x18c   : > { %605 = vperm.xlu1 %816, %v842_v18  }
 0x18e   : > { %v844_v23 = vpop.eup %843 }
 0x190   : > { %615 = vperm.xlu1 %816, %v844_v23  }
 0x1a3   : > { %v411_v26 = vpop.xlane.xlu1 %410 }
 0x1a4   : > { %v427_v27 = vadd.f32 %v419_v25, %v411_v26 }
 0x1a6   : > { %v761_v28 = vmul.f32 -1.442695, %v427_v27 }
 0x1a7   : > { %v497_v29 = vpop.permute.xlu1 %496 }
 0x1a8   : > { %845 = vpow2.f32 %v761_v28  ;;  %v528_v39 = vmul.f32 %v497_v29, %v1025_v3  ;;  %v529_v41 = vmul.f32 %v497_v29, %v1029_v5 }
 0x1aa   : > { %v541_v47 = vadd.f32 %v540_v42, %v528_v39  ;;  %v554_v49 = vadd.f32 %v553_v44, %v529_v41 }
 0x1ab   : > { %v502_v30 = vpop.permute.xlu1 %501 }
 0x1ac   : > { %v530_v43 = vmul.f32 %v502_v30, %v1037_v9  ;;  %v531_v45 = vmul.f32 %v502_v30, %v1039_v10 }
 0x1ae   : > { %v542_v51 = vadd.f32 %v541_v47, %v530_v43  ;;  %v555_v53 = vadd.f32 %v554_v49, %v531_v45 }
 0x1af   : > { %v507_v32 = vpop.permute.xlu1 %506 }
 0x1b0   : > { %v532_v48 = vmul.f32 %v507_v32, %v1045_v13  ;;  %v533_v50 = vmul.f32 %v507_v32, %v1047_v14 }
 0x1b2   : > { %v846_v33 = vpop.eup %845  ;;  %v543_v56 = vadd.f32 %v542_v51, %v532_v48  ;;  %v556_v58 = vadd.f32 %v555_v53, %v533_v50 }
 0x1b3   : > { %v459_v36 = vadd.f32 1.0, %v846_v33  ;;  %v512_v37 = vpop.permute.xlu1 %511  ;;  %v568_v33 = vstv %s772_s25 }
 0x1b4   : > { %v534_v52 = vmul.f32 %v512_v37, %v1049_v15  ;;  %v535_v54 = vmul.f32 %v512_v37, %v1051_v16 }
 0x1b5   : > { %847 = vrcp.f32 %v459_v36 }
 0x1b6   : > { %v544_v60 = vadd.f32 %v543_v56, %v534_v52  ;;  %v557_v63 = vadd.f32 %v556_v58, %v535_v54 }
 0x1b7   : > { %v517_v46 = vpop.permute.xlu1 %516 }
 0x1b8   : > { %v536_v57 = vmul.f32 %v517_v46, %v1057_v19  ;;  %v537_v59 = vmul.f32 %v517_v46, %v1059_v20 }
 0x1ba   : > { %v545_v4 = vadd.f32 %v544_v60, %v536_v57  ;;  %v558_v8 = vadd.f32 %v557_v63, %v537_v59 }
 0x1bb   : > { %v522_v55 = vpop.permute.xlu1 %521 }
 0x1bc   : > { %v538_v61 = vmul.f32 %v522_v55, %v1061_v21  ;;  %v539_v0 = vmul.f32 %v522_v55, %v1063_v22 }
 0x1be   : > { %v546_v11 = vadd.f32 %v545_v4, %v538_v61  ;;  %v559_v12 = vadd.f32 %v558_v8, %v539_v0 }
 0x1bf   : > { %v848_v62 = vpop.eup %847 }
 0x1c0   : > { %620 = vperm.xlu0 %815, %v848_v62   ;;  %v547_v17 = vrot.slane %v546_v11, 4  ;;  %v560_v18 = vrot.slane %v559_v12, 4 }
 0x1c2   : > { %v548_v23 = vadd.f32 %v547_v17, %v546_v11  ;;  %v561_v24 = vadd.f32 %v560_v18, %v559_v12 }
 0x1c4   : > { %v549_v25 = vrot.slane %v548_v23, 2  ;;  %v562_v26 = vrot.slane %v561_v24, 2 }
 0x1c6   : > { %v550_v27 = vadd.f32 %v549_v25, %v548_v23  ;;  %v563_v28 = vadd.f32 %v562_v26, %v561_v24 }
 0x1c8   : > { %v551_v29 = vrot.slane %v550_v27, 1  ;;  %v564_v30 = vrot.slane %v563_v28, 1 }
 0x1ca   : > { %v552_v31 = vadd.f32 %v551_v29, %v550_v27  ;;  %v565_v32 = vadd.f32 %v564_v30, %v563_v28 }
 0x1cc   : > { %v569_v34 = vadd.f32 %v568_v33, %v552_v31  ;;  %v570_v35 = vadd.f32 %v568_v33, %v565_v32 }
 0x1ce   : > { %v762_v36 = vmul.f32 -1.442695, %v569_v34  ;;  %v763_v37 = vmul.f32 -1.442695, %v570_v35 }
 0x1d0   : > { %849 = vpow2.f32 %v762_v36 }
 0x1d1   : > { %851 = vpow2.f32 %v763_v37 }
 0x1da   : > { %v850_v38 = vpop.eup %849 }
 0x1db   : > { %v852_v39 = vpop.eup %851  ;;  %v577_v40 = vadd.f32 1.0, %v850_v38 }
 0x1dc   : > { %v578_v41 = vadd.f32 1.0, %v852_v39 }
 0x1dd   : > { %853 = vrcp.f32 %v577_v40 }
 0x1de   : > { %855 = vrcp.f32 %v578_v41 }
 0x1e7   : > { %v854_v42 = vpop.eup %853 }
 0x1e8   : > { %v856_v43 = vpop.eup %855 }
 0x202   : > { %v591_v44 = vpop.permute.xlu0 %590 }
 0x203   : > { %v586_v45 = vpop.permute.xlu1 %585  ;;  %v625_v46 = vadd.f32 %v854_v42, %v591_v44  ;;  %v626_v47 = vadd.f32 %v856_v43, %v591_v44 }
 0x204   : > { %v623_v48 = vadd.f32 %v854_v42, %v586_v45  ;;  %v624_v49 = vadd.f32 %v856_v43, %v586_v45 }
 0x205   : > { %v641_v50 = vmul.f32 %v625_v46, %v1031_v6  ;;  %v642_v51 = vmul.f32 %v626_v47, %v1033_v7 }
 0x206   : > { %v639_v52 = vmul.f32 %v623_v48, %v1021_v1  ;;  %v640_v53 = vmul.f32 %v624_v49, %v1023_v2  ;;  %v601_v54 = vpop.permute.xlu0 %600 }
 0x207   : > { %657 = vst [vmem:[%s1207_s10 + $0x10] sm:$0xff] %v641_v50  ;;  %658 = vst [vmem:[%s1207_s10 + $0x18] sm:$0xff] %v642_v51  ;;  %v596_v55 = vpop.permute.xlu1 %595  ;;  %v629_v56 = vadd.f32 %v854_v42, %v601_v54  ;;  %v630_v6 = vadd.f32 %v856_v43, %v601_v54 }
 0x208   : > { %655 = vst [vmem:[%s1207_s10] sm:$0xff] %v639_v52  ;;  %656 = vst [vmem:[%s1207_s10 + $0x8] sm:$0xff] %v640_v53  ;;  %v627_v1 = vadd.f32 %v854_v42, %v596_v55  ;;  %v628_v2 = vadd.f32 %v856_v43, %v596_v55 }
 0x209   : > { %v645_v7 = vmul.f32 %v629_v56, %v1037_v9  ;;  %v646_v57 = vmul.f32 %v630_v6, %v1039_v10 }
 0x20a   : > { %v643_v58 = vmul.f32 %v627_v1, %v1025_v3  ;;  %v644_v59 = vmul.f32 %v628_v2, %v1029_v5  ;;  %v611_v60 = vpop.permute.xlu0 %610 }
 0x20b   : > { %661 = vst [vmem:[%s1207_s10 + $0x30] sm:$0xff] %v645_v7  ;;  %662 = vst [vmem:[%s1207_s10 + $0x38] sm:$0xff] %v646_v57  ;;  %v606_v61 = vpop.permute.xlu1 %605  ;;  %v633_v62 = vadd.f32 %v854_v42, %v611_v60  ;;  %v634_v63 = vadd.f32 %v856_v43, %v611_v60 }
 0x20c   : > { %659 = vst [vmem:[%s1207_s10 + $0x20] sm:$0xff] %v643_v58  ;;  %660 = vst [vmem:[%s1207_s10 + $0x28] sm:$0xff] %v644_v59  ;;  %v631_v9 = vadd.f32 %v854_v42, %v606_v61  ;;  %v632_v10 = vadd.f32 %v856_v43, %v606_v61 }
 0x20d   : > { %v649_v3 = vmul.f32 %v633_v62, %v1049_v15  ;;  %v650_v5 = vmul.f32 %v634_v63, %v1051_v16 }
 0x20e   : > { %v647_v0 = vmul.f32 %v631_v9, %v1045_v13  ;;  %v648_v4 = vmul.f32 %v632_v10, %v1047_v14 }
 0x20f   : > { %665 = vst [vmem:[%s1207_s10 + $0x50] sm:$0xff] %v649_v3  ;;  %666 = vst [vmem:[%s1207_s10 + $0x58] sm:$0xff] %v650_v5  ;;  %v616_v8 = vpop.permute.xlu1 %615 }
 0x210   : > { %663 = vst [vmem:[%s1207_s10 + $0x40] sm:$0xff] %v647_v0  ;;  %664 = vst [vmem:[%s1207_s10 + $0x48] sm:$0xff] %v648_v4  ;;  %v635_v11 = vadd.f32 %v854_v42, %v616_v8  ;;  %v636_v12 = vadd.f32 %v856_v43, %v616_v8 }
 0x212   : > { %v651_v17 = vmul.f32 %v635_v11, %v1057_v19  ;;  %v652_v15 = vmul.f32 %v636_v12, %v1059_v20 }
 0x214   : > { %667 = vst [vmem:[%s1207_s10 + $0x60] sm:$0xff] %v651_v17  ;;  %668 = vst [vmem:[%s1207_s10 + $0x68] sm:$0xff] %v652_v15 }
 0x23f   : > { %v621_v13 = vpop.permute.xlu0 %620 }
 0x240   : > { %v637_v14 = vadd.f32 %v854_v42, %v621_v13  ;;  %v638_v16 = vadd.f32 %v856_v43, %v621_v13 }
 0x242   : > { %v653_v19 = vmul.f32 %v637_v14, %v1061_v21  ;;  %v654_v20 = vmul.f32 %v638_v16, %v1063_v22 }
 0x244   : > { %669 = vst [vmem:[%s1207_s10 + $0x70] sm:$0xff] %v653_v19  ;;  %670 = vst [vmem:[%s1207_s10 + $0x78] sm:$0xff] %v654_v20 }
 0x245   : > { %870 = shalt.err (!%p867_p3)
}
 0x246   : > { %s871_s23 = scalar_lea.hbm %s1238_s18, 2048  ;;  %s875_s30 = scalar_lea.hbm %s1296_s7, 4096 }
 0x247   : > { %p872_p4 = scmp.ne.s32.totalorder %s1238_s18, %s871_s23  ;;  %p876_p9 = scmp.lt.u32.totalorder %s1238_s18, %s1296_s7 }
 0x248   : > { %p877_p10 = scmp.lt.u32.totalorder %s875_s30, %s871_s23  ;;  %p879_p12 = scmp.lt.u32.totalorder %s871_s23, %s1238_s18 }
 0x249   : > { %p873_p7 = pnand %p872_p4, %p1006_p5 }
 0x24a   : > { %p878_p11 = por %p877_p10, %p876_p9 }
 0x24b   : > { %p874_p8 = pneg %p873_p7 }
 0x24c   : > { %p880_p13 = por %p879_p12, %p878_p11 }
 0x24e   : > { %p881_p0 = pnand %p880_p13, %p874_p8 }
 0x250   : > { %884 = shalt.err (!%p881_p0)
}
 0x251   : > { %s923_s14 = smov 256   ;;  %s924_s16 = smov 16  }
 0x252   : > { %773 = dma.vmem_to_hbm [thread:$0]  (%p1006_p5), %s1240_s15, 2048, %s1238_s18, %s1248_s6, %s923_s14, %s923_s14, %s924_s16  }
 0x253 PF: > { %p779_p1 = scmp.ge.s32.totalorder %s919_s29, 2  ;;  %s700_s17 = sand.u32 1, %s907_s26  }
 0x254   : > { %s701_s19 = scalar_lea.sflag [#allocation4], %s700_s17 }
 0x255   : > { %p776_p2 = pnand %p779_p1, %p1010_p6 }
 0x257   : > { %902 = dma.done.wait (!%p776_p2), %s701_s19, 2048  }
 0x258   : > { %904 = vsyncadd (!%p776_p2), %s701_s19, 4294965248  ;;  %p19_p3 = scmp.ge.s32.totalorder %s993_s8, 4   ;;  %s1299_s26 = smov %s911_s27 }
 0x259   : > { %s1300_s27 = smov %s915_s28  ;;  %s1301_s28 = smov %s1004_s11 }
 0x25a   : > { %s1302_s29 = smov %s993_s8  ;;  %21 = sbr.rel (!%p19_p3) target bundleno = 6 (0x6), region = 83 }
 0x261   :  { %706 = vsyncpa [#allocation4], 1 }
 0x262   :  { %708 = vsyncpa [#allocation4 + $0x1], 1 }

</bundles_post_ra>
